<compile_context>
chip_gen: v6e
topology: v6e:2x2x1
jax: 0.10.0
libtpu: 0.0.40
codegen_flags: <defaults>
</compile_context>

<pallas_src>
import jax
import jax.numpy as jnp
from jax.experimental import pallas as pl
from jax.experimental.pallas import tpu as pltpu


def _round_up(n, m):
    return ((n + m - 1) // m) * m


def bias_layer_kernel(x_ref, ab_ref, o_ref):
    # x_ref: (TB, TC) input tile; ab_ref: (2, TC) f32 with row 0 = per-column
    # scale, row 1 = per-column offset. Compute in f32, cast on store.
    x = x_ref[...].astype(jnp.float32)
    a = ab_ref[0:1, :]          # (1, TC) broadcasts over the TB rows
    b = ab_ref[1:2, :]
    o_ref[...] = (a * x + b).astype(o_ref.dtype)


def bias_layer_forward(x, alpha, beta, clss_mask):
    """BiC BiasLayer forward.

    x: (B, C); alpha/beta: (1,) float params; clss_mask: (1, C) {0,1} mask of
    the current-task classes. Returns (B, C) with out[:, c] = alpha*x+beta on
    masked columns and x elsewhere.
    """
    B, C = x.shape
    dtype = x.dtype
    itemsize = jnp.dtype(dtype).itemsize

    # Fold mask + scalar alpha/beta into one stacked (2, C) f32 scale/offset
    # operand (single extra input pipeline instead of two).
    mask = clss_mask.reshape(1, C) > 0
    a_col = jnp.where(mask, alpha.astype(jnp.float32)[0], jnp.float32(1))
    b_col = jnp.where(mask, beta.astype(jnp.float32)[0], jnp.float32(0))
    ab = jnp.concatenate([a_col, b_col], axis=0)          # (2, C) f32

    sub = 16 if dtype == jnp.bfloat16 else 8

    # Column tile: full C when C is not lane-aligned (block dim == array dim is
    # legal); otherwise cap at 2048 lanes so very large class counts still get
    # ~MiB-sized blocks and a 2-D parallel grid.
    if C % 128 == 0:
        tc = min(C, 2048)
    else:
        tc = C
    grid_c = pl.cdiv(C, tc)

    # Row tile: target ~2 MiB blocks, keep >= 2 row tiles when possible so the
    # "parallel" axis can shard across v7x's two TensorCores, and never pad /
    # round B up — the partial trailing block is masked by Pallas.
    if B <= sub:
        tb = B                                            # block dim == array dim
    else:
        target_block_bytes = 2 * 1024 * 1024
        tb_fit = max(sub, (target_block_bytes // (tc * itemsize)) // sub * sub)
        tb_half = _round_up(pl.cdiv(B, 2), sub)           # guarantees >= 2 steps
        tb = max(sub, min(tb_fit, tb_half))
    grid_r = pl.cdiv(B, tb)

    # Explicit VMEM budget: double-buffered x + out tiles plus the (2, tc) ab
    # block, clamped well under v7x's 64 MiB physical VMEM (128 MiB on v5e/v6e).
    block_bytes = tb * tc * itemsize
    need = 4 * block_bytes + 4 * tc * 4 + (1 << 20)
    vmem_limit = int(min(max(need, 32 * 1024 * 1024), 48 * 1024 * 1024))

    return pl.pallas_call(
        bias_layer_kernel,
        out_shape=jax.ShapeDtypeStruct((B, C), dtype),
        grid=(grid_r, grid_c),
        in_specs=[
            pl.BlockSpec((tb, tc), lambda i, j: (i, j)),  # x tile
            pl.BlockSpec((2, tc), lambda i, j: (0, j)),   # stacked scale/offset
        ],
        out_specs=pl.BlockSpec((tb, tc), lambda i, j: (i, j)),
        compiler_params=pltpu.CompilerParams(
            dimension_semantics=("parallel", "parallel"),
            vmem_limit_bytes=vmem_limit,
        ),
    )(x, ab)


def make_bias_layer_params(clss, num_classes):
    """Deterministic init matching the PyTorch module __init__."""
    alpha = jnp.ones((1,), dtype=jnp.float32)   # torch.nn.Parameter(torch.ones(1))
    beta = jnp.zeros((1,), dtype=jnp.float32)   # torch.nn.Parameter(torch.zeros(1))
    unique_classes = sorted(set(int(c) for c in clss))
    clss_idx = jnp.array(unique_classes, dtype=jnp.int32)
    mask = jnp.zeros((1, num_classes), dtype=jnp.float32).at[0, clss_idx].set(1.0)
    return alpha, beta, mask


def reference_forward(x, alpha, beta, mask):
    # Pure-JAX reference mirroring the PyTorch semantics (fp32 params, cast out).
    a_full = jnp.where(mask > 0, alpha.astype(jnp.float32)[0], jnp.float32(1))
    b_full = jnp.where(mask > 0, beta.astype(jnp.float32)[0], jnp.float32(0))
    return (a_full * x.astype(jnp.float32) + b_full).astype(x.dtype)


if __name__ == "__main__":
    key = jax.random.PRNGKey(0)
    B, C = 2, 16                      # batch=2, num_classes=16
    clss = [2, 3, 5, 7, 3]            # current-task classes (duplicates allowed)

    x = jax.random.normal(key, (B, C), dtype=jnp.float32)
    alpha, beta, mask = make_bias_layer_params(clss, C)

    # Non-default alpha/beta to exercise the masked path (params are trainable).
    alpha_t = jnp.array([1.5], dtype=jnp.float32)
    beta_t = jnp.array([-0.25], dtype=jnp.float32)

    out_init = jax.block_until_ready(bias_layer_forward(x, alpha, beta, mask))
    out_trained = jax.block_until_ready(bias_layer_forward(x, alpha_t, beta_t, mask))
    assert out_init.shape == (B, C) and out_trained.shape == (B, C)
    assert jnp.allclose(out_init, reference_forward(x, alpha, beta, mask), atol=1e-6)
    assert jnp.allclose(out_trained, reference_forward(x, alpha_t, beta_t, mask), atol=1e-6)

    # Ragged multi-row-tile shape: B not a tile multiple, C not a 128 multiple.
    B2, C2 = 260, 200
    x2 = jax.random.normal(jax.random.PRNGKey(1), (B2, C2), dtype=jnp.float32)
    _, _, mask2 = make_bias_layer_params([0, 3, 17, 150, 199], C2)
    out2 = jax.block_until_ready(bias_layer_forward(x2, alpha_t, beta_t, mask2))
    assert out2.shape == (B2, C2)
    assert jnp.allclose(out2, reference_forward(x2, alpha_t, beta_t, mask2), atol=1e-6)

    # 2-D grid path: lane-aligned wide C with a partial trailing column block.
    B3, C3 = 16, 2560
    x3 = jax.random.normal(jax.random.PRNGKey(2), (B3, C3), dtype=jnp.float32)
    _, _, mask3 = make_bias_layer_params(range(1000, 1500), C3)
    out3 = jax.block_until_ready(bias_layer_forward(x3, alpha_t, beta_t, mask3))
    assert out3.shape == (B3, C3)
    assert jnp.allclose(out3, reference_forward(x3, alpha_t, beta_t, mask3), atol=1e-6)

    # bf16 input: kernel computes the affine transform in f32, casts on store.
    xb = x.astype(jnp.bfloat16)
    outb = jax.block_until_ready(bias_layer_forward(xb, alpha_t, beta_t, mask))
    assert jnp.allclose(
        outb.astype(jnp.float32),
        reference_forward(xb, alpha_t, beta_t, mask).astype(jnp.float32),
        atol=1e-2,
    )

    print("KERNEL_OK")
</pallas_src>

<mosaic_0001>
module attributes {stable_mosaic.version = 11 : i64} {
  func.func @bias_layer_kernel(%arg0: i32, %arg1: i32, %arg2: memref<2x16xf32, #tpu.memory_space<vmem>>, %arg3: memref<2x16xf32, #tpu.memory_space<vmem>>, %arg4: memref<2x16xf32, #tpu.memory_space<vmem>>) attributes {dimension_semantics = [#tpu.dimension_semantics<parallel>, #tpu.dimension_semantics<parallel>], iteration_bounds = array<i64: 1, 1>, scalar_prefetch = 0 : i64, scratch_operands = 0 : i64, tpu.core_type = #tpu.core_type<tc>, window_params = [{transform_indices = @transform_0, window_bounds = array<i64: 2, 16>}, {transform_indices = @transform_1, window_bounds = array<i64: 2, 16>}, {transform_indices = @transform_2, window_bounds = array<i64: 2, 16>}]} {
    %c0 = arith.constant 0 : index
    %c0_0 = arith.constant 0 : index
    %0 = vector.load %arg2[%c0, %c0_0] : memref<2x16xf32, #tpu.memory_space<vmem>>, vector<2x16xf32>
    %c0_1 = arith.constant 0 : index
    %c0_2 = arith.constant 0 : index
    %1 = vector.load %arg3[%c0_1, %c0_2] : memref<2x16xf32, #tpu.memory_space<vmem>>, vector<1x16xf32>
    %c1 = arith.constant 1 : index
    %c0_3 = arith.constant 0 : index
    %2 = vector.load %arg3[%c1, %c0_3] : memref<2x16xf32, #tpu.memory_space<vmem>>, vector<1x16xf32>
    %3 = vector.broadcast %1 : vector<1x16xf32> to vector<2x16xf32>
    %4 = arith.mulf %3, %0 : vector<2x16xf32>
    %5 = vector.broadcast %2 : vector<1x16xf32> to vector<2x16xf32>
    %6 = arith.addf %4, %5 : vector<2x16xf32>
    %c0_4 = arith.constant 0 : index
    %c0_5 = arith.constant 0 : index
    %7 = vector.load %arg4[%c0_4, %c0_5] : memref<2x16xf32, #tpu.memory_space<vmem>>, vector<2x16xf32>
    tpu.vector_store %arg4[%c0_4, %c0_5], %6 {strides = array<i32>} : memref<2x16xf32, #tpu.memory_space<vmem>>, vector<2x16xf32>,
    return
  }
  func.func @transform_0(%arg0: i32, %arg1: i32) -> (i32, i32) {
    %c0_i32 = arith.constant 0 : i32
    return %arg0, %arg1 : i32, i32
  }
  func.func @transform_1(%arg0: i32, %arg1: i32) -> (i32, i32) {
    %c0_i32 = arith.constant 0 : i32
    %c0_i32_0 = arith.constant 0 : i32
    return %c0_i32, %arg1 : i32, i32
  }
  func.func @transform_2(%arg0: i32, %arg1: i32) -> (i32, i32) {
    %c0_i32 = arith.constant 0 : i32
    return %arg0, %arg1 : i32, i32
  }
}

</mosaic_0001>

<bundles_post_ra>
// kernel: tpu_custom_call.1
= control target key start
LH: loop header
LB: loop body
LE: loop exit
PB: predicated region body
PF: predicated region fallthrough
CT: control target
= control target key end

     0   :  { %7 = vsyncpa [#allocation3], 0  ;;  %s165_s0 = inlined_call_operand.hbm [shape: f32[2,16], index: 0, kind: input, shape index: {}]   ;;  %s166_s1 = inlined_call_operand.hbm [shape: f32[2,16], index: 1, kind: input, shape index: {}]   ;;  %s167_s2 = inlined_call_operand.hbm [shape: f32[2,16], index: 2, kind: output, shape index: {}]  }
   0x1   :  { %8 = vsyncpa [#allocation6], 0 }
   0x2   :  { %9 = vsyncpa [#allocation4], 0  ;;  %s138_s9 = smov [#allocation2]   ;;  %s139_s11 = smov [#allocation5]  }
   0x3   :  { %s16_s10 = sshll.u32 %s138_s9, 4  ;;  %s26_s12 = sshll.u32 %s139_s11, 4  ;;  %s17_s10 = int_to_ptr.vmem [resolvable:$true] %s16_s10  ;;  %s27_s12 = int_to_ptr.vmem [resolvable:$true] %s26_s12 }
   0x4   :  { %s80_s13 = scalar_lea.vmem %s17_s10, 32  ;;  %p85_p1 = scmp.lt.s32.totalorder %s17_s10, %s17_s10 }
   0x5   :  { %p81_p0 = scmp.ne.s32.totalorder %s17_s10, %s80_s13  ;;  %p86_p2 = scmp.lt.s32.totalorder %s80_s13, %s80_s13 }
   0x7   :  { %p87_p3 = por %p86_p2, %p85_p1 }
   0x9   :  { %p88_p4 = pnand %p87_p3, %p81_p0 }
   0xb   :  { %91 = shalt.err (!%p88_p4)
}
   0xc   :  { %19 = dma.hbm_to_vmem [thread:$0]  %s165_s0, 32, %s17_s10, [#allocation3]  }
   0xd   :  { %s100_s16 = scalar_lea.vmem %s27_s12, 32  ;;  %p105_p6 = scmp.lt.s32.totalorder %s27_s12, %s27_s12 }
   0xe   :  { %p101_p5 = scmp.ne.s32.totalorder %s27_s12, %s100_s16  ;;  %p106_p7 = scmp.lt.s32.totalorder %s100_s16, %s100_s16 }
  0x10   :  { %p107_p8 = por %p106_p7, %p105_p6 }
  0x12   :  { %p108_p9 = pnand %p107_p8, %p101_p5 }
  0x14   :  { %111 = shalt.err (!%p108_p9)
}
  0x15   :  { %29 = dma.hbm_to_vmem [thread:$0]  %s166_s1, 32, %s27_s12, [#allocation6]  }
  0x16   :  { %132 = dma.done.wait [#allocation3], 32  }
  0x17   :  { %133 = vsyncadd [#allocation3], 4294967264 }
  0x18   :  { %134 = dma.done.wait [#allocation6], 32  }
  0x19   :  { %135 = vsyncadd [#allocation6], 4294967264  ;;  %s140_s19 = smov [#allocation7]   ;;  %v36_v0 = vld [vmem:[#allocation2] sm:$0x3]  ;;  %vm49_vm0 = vcmask 123904  }
  0x1a   :  { %s57_s20 = sshll.u32 %s140_s19, 4  ;;  %v67_v1 = vld [vmem:[#allocation5] ss:$0 sm:$0xff]  ;;  %v68_v2 = vld [vmem:[#allocation5 + $0x1] ss:$0 sm:$0xff]  ;;  %s58_s20 = int_to_ptr.vmem [resolvable:$true] %s57_s20 }
  0x1b   :  { %v43_v3 = vmul.f32 %v67_v1, %v36_v0  ;;  %s112_s0 = scalar_lea.vmem %s58_s20, 32  ;;  %p117_p11 = scmp.lt.s32.totalorder %s58_s20, %s58_s20 }
  0x1c   :  { %p113_p10 = scmp.ne.s32.totalorder %s58_s20, %s112_s0  ;;  %p118_p12 = scmp.lt.s32.totalorder %s112_s0, %s112_s0 }
  0x1d   :  { %v48_v4 = vadd.f32 %v68_v2, %v43_v3 }
  0x1e   :  { %p119_p13 = por %p118_p12, %p117_p11 }
  0x1f   :  { %50 = vst.msk [vmem:[#allocation7] sm:$0x3] %vm49_vm0, %v48_v4 }
  0x20   :  { %p120_p0 = pnand %p119_p13, %p113_p10 }
  0x22   :  { %123 = shalt.err (!%p120_p0)
}
  0x23   :  { %60 = dma.vmem_to_hbm [thread:$0]  %s58_s20, 32, %s167_s2, [#allocation4]  }
  0x24   :  { %136 = dma.done.wait [#allocation4], 32  }
  0x25   :  { %137 = vsyncadd [#allocation4], 4294967264 }
  0x26   :  { %64 = vsyncpa [#allocation3], 1 }
  0x27   :  { %65 = vsyncpa [#allocation6], 1 }
  0x28   :  { %66 = vsyncpa [#allocation4], 1 }

</bundles_post_ra>
